<compile_context>
chip_gen: v5e
topology: v5e:2x2
jax: 0.10.0
libtpu: 0.0.40
codegen_flags: <defaults>
</compile_context>

<pallas_src>
import jax
import jax.numpy as jnp
import numpy as np
from jax import lax
from jax.experimental import pallas as pl
from jax.experimental.pallas import tpu as pltpu


# ----------------------------------------------------------------------------
# Fused Pallas kernel (one image per grid step)
# ----------------------------------------------------------------------------
def _make_block_kernel(Ho, Wo, C, use_conv_shortcut):
    HoWo = Ho * Wo
    PAD = Wo + 1  # halo rows (one output-row + one pixel) on each side of the scratch

    def kernel(p1_ref, w1_ref, b1_ref, w2_ref, b2_ref,
               sc_ref, wsc_ref, bsc_ref,
               w_fc1_ref, b_fc1_ref, w_fc2_ref, b_fc2_ref,
               o_ref, y1_scr):
        # ---- conv1 (im2col patches) + folded BN1 + ReLU ----------------- (HoWo, C)
        y1 = jnp.dot(p1_ref[0], w1_ref[...], preferred_element_type=jnp.float32)
        y1 = jnp.maximum(y1 + b1_ref[...], 0.0)

        # ---- stage y1 into a zero-padded flattened-row scratch ----------------------
        y1_scr[...] = jnp.zeros_like(y1_scr)
        y1_scr[PAD:PAD + HoWo, :] = y1

        # column index of every flattened output row (for +-1 horizontal tap masking)
        col = lax.broadcasted_iota(jnp.int32, (HoWo, 1), 0) % Wo

        # ---- conv2 (3x3, stride 1, pad 1) as 9 accumulating bf16 MXU dots -----------
        acc = jnp.zeros((HoWo, C), jnp.float32)
        for dh in (-1, 0, 1):
            for dw in (-1, 0, 1):
                start = PAD + dh * Wo + dw                    # static slice start
                win = y1_scr[start:start + HoWo, :]           # (HoWo, C) f32
                if dw != 0:
                    valid = ((col + dw >= 0) & (col + dw < Wo)).astype(jnp.float32)
                    win = win * valid
                k = (dh + 1) * 3 + (dw + 1)
                acc = acc + jnp.dot(win.astype(jnp.bfloat16), w2_ref[k],
                                    preferred_element_type=jnp.float32)
        residual = jnp.maximum(acc + b2_ref[...], 0.0)        # (HoWo, C) f32

        # ---- squeeze: global average pool over this image's pixels ------- (1, C)
        squeeze = jnp.mean(residual, axis=0, keepdims=True)

        # ---- excitation MLP: Linear -> ReLU -> Linear -> Sigmoid ---------- (1, C)
        e = jnp.dot(squeeze, w_fc1_ref[...],
                    preferred_element_type=jnp.float32) + b_fc1_ref[...]
        e = jnp.maximum(e, 0.0)
        e = jnp.dot(e, w_fc2_ref[...],
                    preferred_element_type=jnp.float32) + b_fc2_ref[...]
        e = jax.nn.sigmoid(e)

        # ---- shortcut ---------------------------------------------------- (HoWo, C)
        if use_conv_shortcut:
            shortcut = jnp.dot(sc_ref[0], wsc_ref[...],
                               preferred_element_type=jnp.float32) + bsc_ref[...]
        else:
            shortcut = sc_ref[0].astype(jnp.float32)

        # ---- gated residual + shortcut, final ReLU -----------------------------------
        o_ref[0] = jnp.maximum(residual * e + shortcut, 0.0)

    return kernel


# ----------------------------------------------------------------------------
# Glue: im2col (conv1 only), BN folding, parameter init
# ----------------------------------------------------------------------------
def _im2col(x_pad, k, stride, Ho, Wo):
    """x_pad: NHWC already spatially padded. Channel order: (kh, kw, ci)."""
    cols = []
    for kh in range(k):
        for kw in range(k):
            cols.append(x_pad[:, kh:kh + stride * Ho:stride,
                              kw:kw + stride * Wo:stride, :])
    return jnp.concatenate(cols, axis=-1)        # (N, Ho, Wo, k*k*C)


def _fold_conv_bn(w, conv_b, gamma, beta, mean, var, eps=1e-5):
    """Fold BN running stats + conv bias. Returns bf16 weights, f32 bias row."""
    s = gamma / jnp.sqrt(var + eps)
    w_f = (w.astype(jnp.float32) * s).astype(jnp.bfloat16)   # scale last (out-ch) dim
    b_f = (conv_b * s + beta - mean * s)[None, :].astype(jnp.float32)
    return w_f, b_f


def init_params(key, cin, cout, r=16):
    h = max(cout // r, 1)
    ks = jax.random.split(key, 24)
    n = lambda k, shp, sc: sc * jax.random.normal(k, shp, jnp.float32)
    bn = lambda k0, k1, k2, k3, c: (
        1.0 + n(k0, (c,), 0.1),                     # gamma
        n(k1, (c,), 0.1),                           # beta
        n(k2, (c,), 0.05),                          # running_mean
        1.0 + 0.1 * jax.random.uniform(k3, (c,)))   # running_var (>0)
    p = {}
    p['w1'], p['b1'] = n(ks[0], (cout, cin, 3, 3), 0.1), n(ks[1], (cout,), 0.05)
    p['bn1'] = bn(ks[2], ks[3], ks[4], ks[5], cout)
    p['w2'], p['b2'] = n(ks[6], (cout, cout, 3, 3), 0.1), n(ks[7], (cout,), 0.05)
    p['bn2'] = bn(ks[8], ks[9], ks[10], ks[11], cout)
    p['wsc'], p['bsc'] = n(ks[12], (cout, cin, 1, 1), 0.1), n(ks[13], (cout,), 0.05)
    p['bnsc'] = bn(ks[14], ks[15], ks[16], ks[17], cout)
    p['fc1w'], p['fc1b'] = n(ks[18], (h, cout), 0.2), n(ks[19], (h,), 0.05)
    p['fc2w'], p['fc2b'] = n(ks[20], (cout, h), 0.2), n(ks[21], (cout,), 0.05)
    return p


# ----------------------------------------------------------------------------
# Forward pass (Pallas) and pure-JAX reference
# ----------------------------------------------------------------------------
def basic_residual_se_block(x_nchw, params, stride):
    N, Cin, H, W = x_nchw.shape
    C = params['w1'].shape[0]
    Cr = params['fc1w'].shape[0]
    Ho = (H - 1) // stride + 1
    Wo = (W - 1) // stride + 1
    HoWo = Ho * Wo
    use_conv_shortcut = (stride != 1) or (Cin != C)

    x_nhwc = jnp.transpose(x_nchw, (0, 2, 3, 1)).astype(jnp.float32)

    # conv1 folded weights, im2col patches (bf16 MXU operands)
    w1m = jnp.transpose(params['w1'], (2, 3, 1, 0)).reshape(9 * Cin, C)
    w1m, b1m = _fold_conv_bn(w1m, params['b1'], *params['bn1'])
    x_pad = jnp.pad(x_nhwc, ((0, 0), (1, 1), (1, 1), (0, 0)))
    p1 = _im2col(x_pad, 3, stride, Ho, Wo).reshape(N, HoWo, 9 * Cin)
    p1 = p1.astype(jnp.bfloat16)

    # conv2 folded weights, one (C, C) matrix per 3x3 tap
    w2m = jnp.transpose(params['w2'], (2, 3, 1, 0)).reshape(9, C, C)
    w2m, b2m = _fold_conv_bn(w2m, params['b2'], *params['bn2'])

    # shortcut path
    x_s = x_nhwc[:, ::stride, ::stride, :][:, :Ho, :Wo, :].reshape(N, HoWo, Cin)
    if use_conv_shortcut:
        wscm = params['wsc'][:, :, 0, 0].T                    # (Cin, C)
        wscm, bscm = _fold_conv_bn(wscm, params['bsc'], *params['bnsc'])
        sc_in = x_s.astype(jnp.bfloat16)
    else:
        wscm = jnp.zeros((Cin, C), jnp.bfloat16)              # unused placeholder
        bscm = jnp.zeros((1, C), jnp.float32)
        sc_in = x_s.astype(jnp.float32)                       # exact identity shortcut
    Csc = sc_in.shape[-1]

    # excitation MLP params (tiny; f32)
    w_fc1 = params['fc1w'].T.astype(jnp.float32)              # (C, Cr)
    b_fc1 = params['fc1b'][None, :].astype(jnp.float32)
    w_fc2 = params['fc2w'].T.astype(jnp.float32)              # (Cr, C)
    b_fc2 = params['fc2b'][None, :].astype(jnp.float32)

    kernel = _make_block_kernel(Ho, Wo, C, use_conv_shortcut)
    K1 = 9 * Cin

    out_flat = pl.pallas_call(
        kernel,
        out_shape=jax.ShapeDtypeStruct((N, HoWo, C), jnp.float32),
        grid=(N,),
        in_specs=[
            pl.BlockSpec((1, HoWo, K1), lambda n: (n, 0, 0)),   # p1 patches (per image)
            pl.BlockSpec((K1, C), lambda n: (0, 0)),            # w1 (resident)
            pl.BlockSpec((1, C), lambda n: (0, 0)),             # b1
            pl.BlockSpec((9, C, C), lambda n: (0, 0, 0)),       # w2 per tap (resident)
            pl.BlockSpec((1, C), lambda n: (0, 0)),             # b2
            pl.BlockSpec((1, HoWo, Csc), lambda n: (n, 0, 0)),  # shortcut input
            pl.BlockSpec((Csc, C), lambda n: (0, 0)),           # wsc
            pl.BlockSpec((1, C), lambda n: (0, 0)),             # bsc
            pl.BlockSpec((C, Cr), lambda n: (0, 0)),            # fc1 w
            pl.BlockSpec((1, Cr), lambda n: (0, 0)),            # fc1 b
            pl.BlockSpec((Cr, C), lambda n: (0, 0)),            # fc2 w
            pl.BlockSpec((1, C), lambda n: (0, 0)),             # fc2 b
        ],
        out_specs=pl.BlockSpec((1, HoWo, C), lambda n: (n, 0, 0)),
        scratch_shapes=[pltpu.VMEM((HoWo + 2 * Wo + 2, C), jnp.float32)],
        compiler_params=pltpu.CompilerParams(
            dimension_semantics=("parallel",),
            vmem_limit_bytes=48 * 1024 * 1024),
    )(p1, w1m, b1m, w2m, b2m, sc_in, wscm, bscm, w_fc1, b_fc1, w_fc2, b_fc2)

    out = out_flat.reshape(N, Ho, Wo, C)
    return jnp.transpose(out, (0, 3, 1, 2))


def reference_forward(x, p, stride, eps=1e-5):
    def conv(x, w, b, s, pad):
        y = lax.conv_general_dilated(x, w, (s, s), ((pad, pad), (pad, pad)),
                                     dimension_numbers=('NCHW', 'OIHW', 'NCHW'))
        return y + b[None, :, None, None]

    def bn(x, g, bt, m, v):
        return ((x - m[None, :, None, None]) / jnp.sqrt(v + eps)[None, :, None, None]
                * g[None, :, None, None] + bt[None, :, None, None])

    Cin = x.shape[1]
    C = p['w1'].shape[0]
    r1 = jnp.maximum(bn(conv(x, p['w1'], p['b1'], stride, 1), *p['bn1']), 0.0)
    r2 = jnp.maximum(bn(conv(r1, p['w2'], p['b2'], 1, 1), *p['bn2']), 0.0)
    if stride != 1 or Cin != C:
        sc = bn(conv(x, p['wsc'], p['bsc'], stride, 0), *p['bnsc'])
    else:
        sc = x
    sq = r2.mean(axis=(2, 3))
    e = jnp.maximum(sq @ p['fc1w'].T + p['fc1b'], 0.0)
    e = jax.nn.sigmoid(e @ p['fc2w'].T + p['fc2b'])
    return jnp.maximum(r2 * e[:, :, None, None] + sc, 0.0)


# ----------------------------------------------------------------------------
if __name__ == "__main__":
    key = jax.random.PRNGKey(0)
    kx1, kp1, kx2, kp2 = jax.random.split(key, 4)

    # config 1: strided block with 1x1 conv+BN shortcut
    N, Cin, H, W, Cout, stride = 2, 16, 8, 8, 32, 2
    x = jax.random.normal(kx1, (N, Cin, H, W), jnp.float32)
    params = init_params(kp1, Cin, Cout, r=16)
    out = jax.block_until_ready(basic_residual_se_block(x, params, stride))
    ref = jax.block_until_ready(reference_forward(x, params, stride))
    np.testing.assert_allclose(np.asarray(out), np.asarray(ref), rtol=3e-2, atol=3e-2)
    assert out.shape == (N, Cout, H // stride, W // stride)

    # config 2: stride-1 block with identity shortcut (Cin == Cout)
    N2, C2, H2, W2 = 2, 32, 8, 8
    x2 = jax.random.normal(kx2, (N2, C2, H2, W2), jnp.float32)
    params2 = init_params(kp2, C2, C2, r=16)
    out2 = jax.block_until_ready(basic_residual_se_block(x2, params2, 1))
    ref2 = jax.block_until_ready(reference_forward(x2, params2, 1))
    np.testing.assert_allclose(np.asarray(out2), np.asarray(ref2), rtol=3e-2, atol=3e-2)
    assert out2.shape == (N2, C2, H2, W2)

    print("KERNEL_OK")
</pallas_src>

<mosaic_0001>
module attributes {stable_mosaic.version = 11 : i64} {
  func.func @kernel(%arg0: i32, %arg1: memref<1x16x144xbf16, #tpu.memory_space<vmem>>, %arg2: memref<144x32xbf16, #tpu.memory_space<vmem>>, %arg3: memref<1x32xf32, #tpu.memory_space<vmem>>, %arg4: memref<9x32x32xbf16, #tpu.memory_space<vmem>>, %arg5: memref<1x32xf32, #tpu.memory_space<vmem>>, %arg6: memref<1x16x16xbf16, #tpu.memory_space<vmem>>, %arg7: memref<16x32xbf16, #tpu.memory_space<vmem>>, %arg8: memref<1x32xf32, #tpu.memory_space<vmem>>, %arg9: memref<32x2xf32, #tpu.memory_space<vmem>>, %arg10: memref<1x2xf32, #tpu.memory_space<vmem>>, %arg11: memref<2x32xf32, #tpu.memory_space<vmem>>, %arg12: memref<1x32xf32, #tpu.memory_space<vmem>>, %arg13: memref<1x16x32xf32, #tpu.memory_space<vmem>>, %arg14: memref<26x32xf32, #tpu.memory_space<vmem>>) attributes {dimension_semantics = [#tpu.dimension_semantics<parallel>], iteration_bounds = array<i64: 2>, scalar_prefetch = 0 : i64, scratch_operands = 1 : i64, tpu.core_type = #tpu.core_type<tc>, window_params = [{transform_indices = @transform_0, window_bounds = array<i64: 1, 16, 144>}, {pipeline_mode = #tpu.pipeline_mode<synchronous>, transform_indices = @transform_1, window_bounds = array<i64: 144, 32>}, {pipeline_mode = #tpu.pipeline_mode<synchronous>, transform_indices = @transform_2, window_bounds = array<i64: 1, 32>}, {pipeline_mode = #tpu.pipeline_mode<synchronous>, transform_indices = @transform_3, window_bounds = array<i64: 9, 32, 32>}, {pipeline_mode = #tpu.pipeline_mode<synchronous>, transform_indices = @transform_4, window_bounds = array<i64: 1, 32>}, {transform_indices = @transform_5, window_bounds = array<i64: 1, 16, 16>}, {pipeline_mode = #tpu.pipeline_mode<synchronous>, transform_indices = @transform_6, window_bounds = array<i64: 16, 32>}, {pipeline_mode = #tpu.pipeline_mode<synchronous>, transform_indices = @transform_7, window_bounds = array<i64: 1, 32>}, {pipeline_mode = #tpu.pipeline_mode<synchronous>, transform_indices = @transform_8, window_bounds = array<i64: 32, 2>}, {pipeline_mode = #tpu.pipeline_mode<synchronous>, transform_indices = @transform_9, window_bounds = array<i64: 1, 2>}, {pipeline_mode = #tpu.pipeline_mode<synchronous>, transform_indices = @transform_10, window_bounds = array<i64: 2, 32>}, {pipeline_mode = #tpu.pipeline_mode<synchronous>, transform_indices = @transform_11, window_bounds = array<i64: 1, 32>}, {transform_indices = @transform_12, window_bounds = array<i64: 1, 16, 32>}]} {
    %c0 = arith.constant 0 : index
    %c0_0 = arith.constant 0 : index
    %c0_1 = arith.constant 0 : index
    %0 = vector.load %arg1[%c0, %c0_0, %c0_1] : memref<1x16x144xbf16, #tpu.memory_space<vmem>>, vector<1x16x144xbf16>
    %1 = vector.shape_cast %0 : vector<1x16x144xbf16> to vector<16x144xbf16>
    %c0_2 = arith.constant 0 : index
    %c0_3 = arith.constant 0 : index
    %2 = vector.load %arg2[%c0_2, %c0_3] : memref<144x32xbf16, #tpu.memory_space<vmem>>, vector<144x32xbf16>
    %cst = arith.constant dense<0.000000e+00> : vector<16x32xf32>
    %3 = tpu.matmul %1, %2, %cst {dimension_numbers = #tpu.dot_dimension_numbers<[1], [0], [0], [1], [0, 0, 1, 1], [], []>} : vector<16x144xbf16>, vector<144x32xbf16>, vector<16x32xf32> -> vector<16x32xf32>
    %c0_4 = arith.constant 0 : index
    %c0_5 = arith.constant 0 : index
    %4 = vector.load %arg3[%c0_4, %c0_5] : memref<1x32xf32, #tpu.memory_space<vmem>>, vector<1x32xf32>
    %5 = vector.broadcast %4 : vector<1x32xf32> to vector<16x32xf32>
    %6 = arith.addf %3, %5 : vector<16x32xf32>
    %cst_6 = arith.constant 0.000000e+00 : f32
    %7 = vector.broadcast %cst_6 : f32 to vector<16x32xf32>
    %8 = arith.maximumf %6, %7 : vector<16x32xf32>
    %cst_7 = arith.constant 0.000000e+00 : f32
    %9 = vector.broadcast %cst_7 : f32 to vector<26x32xf32>
    %c0_8 = arith.constant 0 : index
    %c0_9 = arith.constant 0 : index
    %10 = vector.load %arg14[%c0_8, %c0_9] : memref<26x32xf32, #tpu.memory_space<vmem>>, vector<26x32xf32>
    tpu.vector_store %arg14[%c0_8, %c0_9], %9 {strides = array<i32>} : memref<26x32xf32, #tpu.memory_space<vmem>>, vector<26x32xf32>,
    %c5 = arith.constant 5 : index
    %c0_10 = arith.constant 0 : index
    %11 = vector.load %arg14[%c5, %c0_10] : memref<26x32xf32, #tpu.memory_space<vmem>>, vector<16x32xf32>
    tpu.vector_store %arg14[%c5, %c0_10], %8 {strides = array<i32>} : memref<26x32xf32, #tpu.memory_space<vmem>>, vector<16x32xf32>,
    %12 = tpu.iota {dimensions = array<i32: 0>} : vector<16x1xi32>
    %c4_i32 = arith.constant 4 : i32
    %c0_i32 = arith.constant 0 : i32
    %13 = arith.cmpi eq, %c4_i32, %c0_i32 : i32
    %c1_i32 = arith.constant 1 : i32
    %14 = arith.select %13, %c1_i32, %c4_i32 : i32
    %15 = vector.broadcast %14 : i32 to vector<16x1xi32>
    %16 = arith.remsi %12, %15 : vector<16x1xi32>
    %c0_i32_11 = arith.constant 0 : i32
    %17 = vector.broadcast %c0_i32_11 : i32 to vector<16x1xi32>
    %18 = arith.cmpi ne, %16, %17 : vector<16x1xi32>
    %c0_i32_12 = arith.constant 0 : i32
    %19 = vector.broadcast %c0_i32_12 : i32 to vector<16x1xi32>
    %20 = arith.cmpi slt, %16, %19 : vector<16x1xi32>
    %c0_i32_13 = arith.constant 0 : i32
    %21 = arith.cmpi slt, %14, %c0_i32_13 : i32
    %22 = vector.broadcast %21 : i1 to vector<16x1xi1>
    %23 = vector.broadcast %22 : vector<16x1xi1> to vector<16x1xi1>
    %24 = arith.xori %20, %23 : vector<16x1xi1>
    %25 = arith.andi %24, %18 : vector<16x1xi1>
    %26 = vector.broadcast %14 : i32 to vector<16x1xi32>
    %27 = arith.addi %16, %26 : vector<16x1xi32>
    %28 = arith.select %25, %27, %16 : vector<16x1xi1>, vector<16x1xi32>
    %cst_14 = arith.constant 0.000000e+00 : f32
    %29 = vector.broadcast %cst_14 : f32 to vector<16x32xf32>
    %c0_15 = arith.constant 0 : index
    %c0_16 = arith.constant 0 : index
    %30 = vector.load %arg14[%c0_15, %c0_16] : memref<26x32xf32, #tpu.memory_space<vmem>>, vector<16x32xf32>
    %c-1_i32 = arith.constant -1 : i32
    %31 = vector.broadcast %c-1_i32 : i32 to vector<16x1xi32>
    %32 = arith.addi %28, %31 : vector<16x1xi32>
    %c0_i32_17 = arith.constant 0 : i32
    %33 = vector.broadcast %c0_i32_17 : i32 to vector<16x1xi32>
    %34 = arith.cmpi sge, %32, %33 : vector<16x1xi32>
    %c-1_i32_18 = arith.constant -1 : i32
    %35 = vector.broadcast %c-1_i32_18 : i32 to vector<16x1xi32>
    %36 = arith.addi %28, %35 : vector<16x1xi32>
    %c4_i32_19 = arith.constant 4 : i32
    %37 = vector.broadcast %c4_i32_19 : i32 to vector<16x1xi32>
    %38 = arith.cmpi slt, %36, %37 : vector<16x1xi32>
    %39 = arith.andi %34, %38 : vector<16x1xi1>
    %40 = arith.extui %39 : vector<16x1xi1> to vector<16x1xi32>
    %41 = arith.sitofp %40 : vector<16x1xi32> to vector<16x1xf32>
    %42 = vector.broadcast %41 : vector<16x1xf32> to vector<16x32xf32>
    %43 = arith.mulf %30, %42 : vector<16x32xf32>
    %44 = arith.truncf %43 : vector<16x32xf32> to vector<16x32xbf16>
    %c0_20 = arith.constant 0 : index
    %c0_21 = arith.constant 0 : index
    %c0_22 = arith.constant 0 : index
    %45 = vector.load %arg4[%c0_20, %c0_21, %c0_22] : memref<9x32x32xbf16, #tpu.memory_space<vmem>>, vector<1x32x32xbf16>
    %46 = vector.shape_cast %45 : vector<1x32x32xbf16> to vector<32x32xbf16>
    %cst_23 = arith.constant dense<0.000000e+00> : vector<16x32xf32>
    %47 = tpu.matmul %44, %46, %cst_23 {dimension_numbers = #tpu.dot_dimension_numbers<[1], [0], [0], [1], [0, 0, 1, 1], [], []>} : vector<16x32xbf16>, vector<32x32xbf16>, vector<16x32xf32> -> vector<16x32xf32>
    %48 = arith.addf %29, %47 : vector<16x32xf32>
    %c1 = arith.constant 1 : index
    %c0_24 = arith.constant 0 : index
    %49 = vector.load %arg14[%c1, %c0_24] : memref<26x32xf32, #tpu.memory_space<vmem>>, vector<16x32xf32>
    %50 = arith.truncf %49 : vector<16x32xf32> to vector<16x32xbf16>
    %c1_25 = arith.constant 1 : index
    %c0_26 = arith.constant 0 : index
    %c0_27 = arith.constant 0 : index
    %51 = vector.load %arg4[%c1_25, %c0_26, %c0_27] : memref<9x32x32xbf16, #tpu.memory_space<vmem>>, vector<1x32x32xbf16>
    %52 = vector.shape_cast %51 : vector<1x32x32xbf16> to vector<32x32xbf16>
    %cst_28 = arith.constant dense<0.000000e+00> : vector<16x32xf32>
    %53 = tpu.matmul %50, %52, %cst_28 {dimension_numbers = #tpu.dot_dimension_numbers<[1], [0], [0], [1], [0, 0, 1, 1], [], []>} : vector<16x32xbf16>, vector<32x32xbf16>, vector<16x32xf32> -> vector<16x32xf32>
    %54 = arith.addf %48, %53 : vector<16x32xf32>
    %c2 = arith.constant 2 : index
    %c0_29 = arith.constant 0 : index
    %55 = vector.load %arg14[%c2, %c0_29] : memref<26x32xf32, #tpu.memory_space<vmem>>, vector<16x32xf32>
    %c1_i32_30 = arith.constant 1 : i32
    %56 = vector.broadcast %c1_i32_30 : i32 to vector<16x1xi32>
    %57 = arith.addi %28, %56 : vector<16x1xi32>
    %c0_i32_31 = arith.constant 0 : i32
    %58 = vector.broadcast %c0_i32_31 : i32 to vector<16x1xi32>
    %59 = arith.cmpi sge, %57, %58 : vector<16x1xi32>
    %c1_i32_32 = arith.constant 1 : i32
    %60 = vector.broadcast %c1_i32_32 : i32 to vector<16x1xi32>
    %61 = arith.addi %28, %60 : vector<16x1xi32>
    %c4_i32_33 = arith.constant 4 : i32
    %62 = vector.broadcast %c4_i32_33 : i32 to vector<16x1xi32>
    %63 = arith.cmpi slt, %61, %62 : vector<16x1xi32>
    %64 = arith.andi %59, %63 : vector<16x1xi1>
    %65 = arith.extui %64 : vector<16x1xi1> to vector<16x1xi32>
    %66 = arith.sitofp %65 : vector<16x1xi32> to vector<16x1xf32>
    %67 = vector.broadcast %66 : vector<16x1xf32> to vector<16x32xf32>
    %68 = arith.mulf %55, %67 : vector<16x32xf32>
    %69 = arith.truncf %68 : vector<16x32xf32> to vector<16x32xbf16>
    %c2_34 = arith.constant 2 : index
    %c0_35 = arith.constant 0 : index
    %c0_36 = arith.constant 0 : index
    %70 = vector.load %arg4[%c2_34, %c0_35, %c0_36] : memref<9x32x32xbf16, #tpu.memory_space<vmem>>, vector<1x32x32xbf16>
    %71 = vector.shape_cast %70 : vector<1x32x32xbf16> to vector<32x32xbf16>
    %cst_37 = arith.constant dense<0.000000e+00> : vector<16x32xf32>
    %72 = tpu.matmul %69, %71, %cst_37 {dimension_numbers = #tpu.dot_dimension_numbers<[1], [0], [0], [1], [0, 0, 1, 1], [], []>} : vector<16x32xbf16>, vector<32x32xbf16>, vector<16x32xf32> -> vector<16x32xf32>
    %73 = arith.addf %54, %72 : vector<16x32xf32>
    %c4 = arith.constant 4 : index
    %c0_38 = arith.constant 0 : index
    %74 = vector.load %arg14[%c4, %c0_38] : memref<26x32xf32, #tpu.memory_space<vmem>>, vector<16x32xf32>
    %c-1_i32_39 = arith.constant -1 : i32
    %75 = vector.broadcast %c-1_i32_39 : i32 to vector<16x1xi32>
    %76 = arith.addi %28, %75 : vector<16x1xi32>
    %c0_i32_40 = arith.constant 0 : i32
    %77 = vector.broadcast %c0_i32_40 : i32 to vector<16x1xi32>
    %78 = arith.cmpi sge, %76, %77 : vector<16x1xi32>
    %c-1_i32_41 = arith.constant -1 : i32
    %79 = vector.broadcast %c-1_i32_41 : i32 to vector<16x1xi32>
    %80 = arith.addi %28, %79 : vector<16x1xi32>
    %c4_i32_42 = arith.constant 4 : i32
    %81 = vector.broadcast %c4_i32_42 : i32 to vector<16x1xi32>
    %82 = arith.cmpi slt, %80, %81 : vector<16x1xi32>
    %83 = arith.andi %78, %82 : vector<16x1xi1>
    %84 = arith.extui %83 : vector<16x1xi1> to vector<16x1xi32>
    %85 = arith.sitofp %84 : vector<16x1xi32> to vector<16x1xf32>
    %86 = vector.broadcast %85 : vector<16x1xf32> to vector<16x32xf32>
    %87 = arith.mulf %74, %86 : vector<16x32xf32>
    %88 = arith.truncf %87 : vector<16x32xf32> to vector<16x32xbf16>
    %c3 = arith.constant 3 : index
    %c0_43 = arith.constant 0 : index
    %c0_44 = arith.constant 0 : index
    %89 = vector.load %arg4[%c3, %c0_43, %c0_44] : memref<9x32x32xbf16, #tpu.memory_space<vmem>>, vector<1x32x32xbf16>
    %90 = vector.shape_cast %89 : vector<1x32x32xbf16> to vector<32x32xbf16>
    %cst_45 = arith.constant dense<0.000000e+00> : vector<16x32xf32>
    %91 = tpu.matmul %88, %90, %cst_45 {dimension_numbers = #tpu.dot_dimension_numbers<[1], [0], [0], [1], [0, 0, 1, 1], [], []>} : vector<16x32xbf16>, vector<32x32xbf16>, vector<16x32xf32> -> vector<16x32xf32>
    %92 = arith.addf %73, %91 : vector<16x32xf32>
    %c5_46 = arith.constant 5 : index
    %c0_47 = arith.constant 0 : index
    %93 = vector.load %arg14[%c5_46, %c0_47] : memref<26x32xf32, #tpu.memory_space<vmem>>, vector<16x32xf32>
    %94 = arith.truncf %93 : vector<16x32xf32> to vector<16x32xbf16>
    %c4_48 = arith.constant 4 : index
    %c0_49 = arith.constant 0 : index
    %c0_50 = arith.constant 0 : index
    %95 = vector.load %arg4[%c4_48, %c0_49, %c0_50] : memref<9x32x32xbf16, #tpu.memory_space<vmem>>, vector<1x32x32xbf16>
    %96 = vector.shape_cast %95 : vector<1x32x32xbf16> to vector<32x32xbf16>
    %cst_51 = arith.constant dense<0.000000e+00> : vector<16x32xf32>
    %97 = tpu.matmul %94, %96, %cst_51 {dimension_numbers = #tpu.dot_dimension_numbers<[1], [0], [0], [1], [0, 0, 1, 1], [], []>} : vector<16x32xbf16>, vector<32x32xbf16>, vector<16x32xf32> -> vector<16x32xf32>
    %98 = arith.addf %92, %97 : vector<16x32xf32>
    %c6 = arith.constant 6 : index
    %c0_52 = arith.constant 0 : index
    %99 = vector.load %arg14[%c6, %c0_52] : memref<26x32xf32, #tpu.memory_space<vmem>>, vector<16x32xf32>
    %c1_i32_53 = arith.constant 1 : i32
    %100 = vector.broadcast %c1_i32_53 : i32 to vector<16x1xi32>
    %101 = arith.addi %28, %100 : vector<16x1xi32>
    %c0_i32_54 = arith.constant 0 : i32
    %102 = vector.broadcast %c0_i32_54 : i32 to vector<16x1xi32>
    %103 = arith.cmpi sge, %101, %102 : vector<16x1xi32>
    %c1_i32_55 = arith.constant 1 : i32
    %104 = vector.broadcast %c1_i32_55 : i32 to vector<16x1xi32>
    %105 = arith.addi %28, %104 : vector<16x1xi32>
    %c4_i32_56 = arith.constant 4 : i32
    %106 = vector.broadcast %c4_i32_56 : i32 to vector<16x1xi32>
    %107 = arith.cmpi slt, %105, %106 : vector<16x1xi32>
    %108 = arith.andi %103, %107 : vector<16x1xi1>
    %109 = arith.extui %108 : vector<16x1xi1> to vector<16x1xi32>
    %110 = arith.sitofp %109 : vector<16x1xi32> to vector<16x1xf32>
    %111 = vector.broadcast %110 : vector<16x1xf32> to vector<16x32xf32>
    %112 = arith.mulf %99, %111 : vector<16x32xf32>
    %113 = arith.truncf %112 : vector<16x32xf32> to vector<16x32xbf16>
    %c5_57 = arith.constant 5 : index
    %c0_58 = arith.constant 0 : index
    %c0_59 = arith.constant 0 : index
    %114 = vector.load %arg4[%c5_57, %c0_58, %c0_59] : memref<9x32x32xbf16, #tpu.memory_space<vmem>>, vector<1x32x32xbf16>
    %115 = vector.shape_cast %114 : vector<1x32x32xbf16> to vector<32x32xbf16>
    %cst_60 = arith.constant dense<0.000000e+00> : vector<16x32xf32>
    %116 = tpu.matmul %113, %115, %cst_60 {dimension_numbers = #tpu.dot_dimension_numbers<[1], [0], [0], [1], [0, 0, 1, 1], [], []>} : vector<16x32xbf16>, vector<32x32xbf16>, vector<16x32xf32> -> vector<16x32xf32>
    %117 = arith.addf %98, %116 : vector<16x32xf32>
    %c8 = arith.constant 8 : index
    %c0_61 = arith.constant 0 : index
    %118 = vector.load %arg14[%c8, %c0_61] : memref<26x32xf32, #tpu.memory_space<vmem>>, vector<16x32xf32>
    %c-1_i32_62 = arith.constant -1 : i32
    %119 = vector.broadcast %c-1_i32_62 : i32 to vector<16x1xi32>
    %120 = arith.addi %28, %119 : vector<16x1xi32>
    %c0_i32_63 = arith.constant 0 : i32
    %121 = vector.broadcast %c0_i32_63 : i32 to vector<16x1xi32>
    %122 = arith.cmpi sge, %120, %121 : vector<16x1xi32>
    %c-1_i32_64 = arith.constant -1 : i32
    %123 = vector.broadcast %c-1_i32_64 : i32 to vector<16x1xi32>
    %124 = arith.addi %28, %123 : vector<16x1xi32>
    %c4_i32_65 = arith.constant 4 : i32
    %125 = vector.broadcast %c4_i32_65 : i32 to vector<16x1xi32>
    %126 = arith.cmpi slt, %124, %125 : vector<16x1xi32>
    %127 = arith.andi %122, %126 : vector<16x1xi1>
    %128 = arith.extui %127 : vector<16x1xi1> to vector<16x1xi32>
    %129 = arith.sitofp %128 : vector<16x1xi32> to vector<16x1xf32>
    %130 = vector.broadcast %129 : vector<16x1xf32> to vector<16x32xf32>
    %131 = arith.mulf %118, %130 : vector<16x32xf32>
    %132 = arith.truncf %131 : vector<16x32xf32> to vector<16x32xbf16>
    %c6_66 = arith.constant 6 : index
    %c0_67 = arith.constant 0 : index
    %c0_68 = arith.constant 0 : index
    %133 = vector.load %arg4[%c6_66, %c0_67, %c0_68] : memref<9x32x32xbf16, #tpu.memory_space<vmem>>, vector<1x32x32xbf16>
    %134 = vector.shape_cast %133 : vector<1x32x32xbf16> to vector<32x32xbf16>
    %cst_69 = arith.constant dense<0.000000e+00> : vector<16x32xf32>
    %135 = tpu.matmul %132, %134, %cst_69 {dimension_numbers = #tpu.dot_dimension_numbers<[1], [0], [0], [1], [0, 0, 1, 1], [], []>} : vector<16x32xbf16>, vector<32x32xbf16>, vector<16x32xf32> -> vector<16x32xf32>
    %136 = arith.addf %117, %135 : vector<16x32xf32>
    %c9 = arith.constant 9 : index
    %c0_70 = arith.constant 0 : index
    %137 = vector.load %arg14[%c9, %c0_70] : memref<26x32xf32, #tpu.memory_space<vmem>>, vector<16x32xf32>
    %138 = arith.truncf %137 : vector<16x32xf32> to vector<16x32xbf16>
    %c7 = arith.constant 7 : index
    %c0_71 = arith.constant 0 : index
    %c0_72 = arith.constant 0 : index
    %139 = vector.load %arg4[%c7, %c0_71, %c0_72] : memref<9x32x32xbf16, #tpu.memory_space<vmem>>, vector<1x32x32xbf16>
    %140 = vector.shape_cast %139 : vector<1x32x32xbf16> to vector<32x32xbf16>
    %cst_73 = arith.constant dense<0.000000e+00> : vector<16x32xf32>
    %141 = tpu.matmul %138, %140, %cst_73 {dimension_numbers = #tpu.dot_dimension_numbers<[1], [0], [0], [1], [0, 0, 1, 1], [], []>} : vector<16x32xbf16>, vector<32x32xbf16>, vector<16x32xf32> -> vector<16x32xf32>
    %142 = arith.addf %136, %141 : vector<16x32xf32>
    %c10 = arith.constant 10 : index
    %c0_74 = arith.constant 0 : index
    %143 = vector.load %arg14[%c10, %c0_74] : memref<26x32xf32, #tpu.memory_space<vmem>>, vector<16x32xf32>
    %c1_i32_75 = arith.constant 1 : i32
    %144 = vector.broadcast %c1_i32_75 : i32 to vector<16x1xi32>
    %145 = arith.addi %28, %144 : vector<16x1xi32>
    %c0_i32_76 = arith.constant 0 : i32
    %146 = vector.broadcast %c0_i32_76 : i32 to vector<16x1xi32>
    %147 = arith.cmpi sge, %145, %146 : vector<16x1xi32>
    %c1_i32_77 = arith.constant 1 : i32
    %148 = vector.broadcast %c1_i32_77 : i32 to vector<16x1xi32>
    %149 = arith.addi %28, %148 : vector<16x1xi32>
    %c4_i32_78 = arith.constant 4 : i32
    %150 = vector.broadcast %c4_i32_78 : i32 to vector<16x1xi32>
    %151 = arith.cmpi slt, %149, %150 : vector<16x1xi32>
    %152 = arith.andi %147, %151 : vector<16x1xi1>
    %153 = arith.extui %152 : vector<16x1xi1> to vector<16x1xi32>
    %154 = arith.sitofp %153 : vector<16x1xi32> to vector<16x1xf32>
    %155 = vector.broadcast %154 : vector<16x1xf32> to vector<16x32xf32>
    %156 = arith.mulf %143, %155 : vector<16x32xf32>
    %157 = arith.truncf %156 : vector<16x32xf32> to vector<16x32xbf16>
    %c8_79 = arith.constant 8 : index
    %c0_80 = arith.constant 0 : index
    %c0_81 = arith.constant 0 : index
    %158 = vector.load %arg4[%c8_79, %c0_80, %c0_81] : memref<9x32x32xbf16, #tpu.memory_space<vmem>>, vector<1x32x32xbf16>
    %159 = vector.shape_cast %158 : vector<1x32x32xbf16> to vector<32x32xbf16>
    %cst_82 = arith.constant dense<0.000000e+00> : vector<16x32xf32>
    %160 = tpu.matmul %157, %159, %cst_82 {dimension_numbers = #tpu.dot_dimension_numbers<[1], [0], [0], [1], [0, 0, 1, 1], [], []>} : vector<16x32xbf16>, vector<32x32xbf16>, vector<16x32xf32> -> vector<16x32xf32>
    %161 = arith.addf %142, %160 : vector<16x32xf32>
    %c0_83 = arith.constant 0 : index
    %c0_84 = arith.constant 0 : index
    %162 = vector.load %arg5[%c0_83, %c0_84] : memref<1x32xf32, #tpu.memory_space<vmem>>, vector<1x32xf32>
    %163 = vector.broadcast %162 : vector<1x32xf32> to vector<16x32xf32>
    %164 = arith.addf %161, %163 : vector<16x32xf32>
    %cst_85 = arith.constant 0.000000e+00 : f32
    %165 = vector.broadcast %cst_85 : f32 to vector<16x32xf32>
    %166 = arith.maximumf %164, %165 : vector<16x32xf32>
    %cst_86 = arith.constant dense<0.000000e+00> : vector<32xf32>
    %167 = vector.multi_reduction <add>, %166, %cst_86 [0] : vector<16x32xf32> to vector<32xf32>
    %168 = vector.shape_cast %167 : vector<32xf32> to vector<1x32xf32>
    %cst_87 = arith.constant 1.600000e+01 : f32
    %169 = vector.broadcast %cst_87 : f32 to vector<1x32xf32>
    %170 = arith.divf %168, %169 : vector<1x32xf32>
    %c0_88 = arith.constant 0 : index
    %c0_89 = arith.constant 0 : index
    %171 = vector.load %arg9[%c0_88, %c0_89] : memref<32x2xf32, #tpu.memory_space<vmem>>, vector<32x2xf32>
    %cst_90 = arith.constant dense<0.000000e+00> : vector<1x2xf32>
    %172 = tpu.matmul %170, %171, %cst_90 {dimension_numbers = #tpu.dot_dimension_numbers<[1], [0], [0], [1], [0, 0, 1, 1], [], []>} : vector<1x32xf32>, vector<32x2xf32>, vector<1x2xf32> -> vector<1x2xf32>
    %c0_91 = arith.constant 0 : index
    %c0_92 = arith.constant 0 : index
    %173 = vector.load %arg10[%c0_91, %c0_92] : memref<1x2xf32, #tpu.memory_space<vmem>>, vector<1x2xf32>
    %174 = arith.addf %172, %173 : vector<1x2xf32>
    %cst_93 = arith.constant 0.000000e+00 : f32
    %175 = vector.broadcast %cst_93 : f32 to vector<1x2xf32>
    %176 = arith.maximumf %174, %175 : vector<1x2xf32>
    %c0_94 = arith.constant 0 : index
    %c0_95 = arith.constant 0 : index
    %177 = vector.load %arg11[%c0_94, %c0_95] : memref<2x32xf32, #tpu.memory_space<vmem>>, vector<2x32xf32>
    %cst_96 = arith.constant dense<0.000000e+00> : vector<1x32xf32>
    %178 = tpu.matmul %176, %177, %cst_96 {dimension_numbers = #tpu.dot_dimension_numbers<[1], [0], [0], [1], [0, 0, 1, 1], [], []>} : vector<1x2xf32>, vector<2x32xf32>, vector<1x32xf32> -> vector<1x32xf32>
    %c0_97 = arith.constant 0 : index
    %c0_98 = arith.constant 0 : index
    %179 = vector.load %arg12[%c0_97, %c0_98] : memref<1x32xf32, #tpu.memory_space<vmem>>, vector<1x32xf32>
    %180 = arith.addf %178, %179 : vector<1x32xf32>
    %181 = arith.negf %180 : vector<1x32xf32>
    %182 = math.exp %181 : vector<1x32xf32>
    %cst_99 = arith.constant 1.000000e+00 : f32
    %183 = vector.broadcast %cst_99 : f32 to vector<1x32xf32>
    %184 = arith.addf %183, %182 : vector<1x32xf32>
    %185 = arith.divf %183, %184 : vector<1x32xf32>
    %c0_100 = arith.constant 0 : index
    %c0_101 = arith.constant 0 : index
    %c0_102 = arith.constant 0 : index
    %186 = vector.load %arg6[%c0_100, %c0_101, %c0_102] : memref<1x16x16xbf16, #tpu.memory_space<vmem>>, vector<1x16x16xbf16>
    %187 = vector.shape_cast %186 : vector<1x16x16xbf16> to vector<16x16xbf16>
    %c0_103 = arith.constant 0 : index
    %c0_104 = arith.constant 0 : index
    %188 = vector.load %arg7[%c0_103, %c0_104] : memref<16x32xbf16, #tpu.memory_space<vmem>>, vector<16x32xbf16>
    %cst_105 = arith.constant dense<0.000000e+00> : vector<16x32xf32>
    %189 = tpu.matmul %187, %188, %cst_105 {dimension_numbers = #tpu.dot_dimension_numbers<[1], [0], [0], [1], [0, 0, 1, 1], [], []>} : vector<16x16xbf16>, vector<16x32xbf16>, vector<16x32xf32> -> vector<16x32xf32>
    %c0_106 = arith.constant 0 : index
    %c0_107 = arith.constant 0 : index
    %190 = vector.load %arg8[%c0_106, %c0_107] : memref<1x32xf32, #tpu.memory_space<vmem>>, vector<1x32xf32>
    %191 = vector.broadcast %190 : vector<1x32xf32> to vector<16x32xf32>
    %192 = arith.addf %189, %191 : vector<16x32xf32>
    %193 = vector.broadcast %185 : vector<1x32xf32> to vector<16x32xf32>
    %194 = arith.mulf %166, %193 : vector<16x32xf32>
    %195 = arith.addf %194, %192 : vector<16x32xf32>
    %cst_108 = arith.constant 0.000000e+00 : f32
    %196 = vector.broadcast %cst_108 : f32 to vector<16x32xf32>
    %197 = arith.maximumf %195, %196 : vector<16x32xf32>
    %c0_109 = arith.constant 0 : index
    %c0_110 = arith.constant 0 : index
    %c0_111 = arith.constant 0 : index
    %198 = vector.load %arg13[%c0_109, %c0_110, %c0_111] : memref<1x16x32xf32, #tpu.memory_space<vmem>>, vector<1x16x32xf32>
    %199 = vector.shape_cast %198 : vector<1x16x32xf32> to vector<16x32xf32>
    %200 = vector.shape_cast %197 : vector<16x32xf32> to vector<1x16x32xf32>
    tpu.vector_store %arg13[%c0_109, %c0_110, %c0_111], %200 {strides = array<i32>} : memref<1x16x32xf32, #tpu.memory_space<vmem>>, vector<1x16x32xf32>,
    return
  }
  func.func @transform_0(%arg0: i32) -> (i32, i32, i32) {
    %c0_i32 = arith.constant 0 : i32
    %c0_i32_0 = arith.constant 0 : i32
    %c0_i32_1 = arith.constant 0 : i32
    return %arg0, %c0_i32, %c0_i32_0 : i32, i32, i32
  }
  func.func @transform_1(%arg0: i32) -> (i32, i32) {
    %c0_i32 = arith.constant 0 : i32
    %c0_i32_0 = arith.constant 0 : i32
    %c0_i32_1 = arith.constant 0 : i32
    return %c0_i32, %c0_i32_0 : i32, i32
  }
  func.func @transform_2(%arg0: i32) -> (i32, i32) {
    %c0_i32 = arith.constant 0 : i32
    %c0_i32_0 = arith.constant 0 : i32
    %c0_i32_1 = arith.constant 0 : i32
    return %c0_i32, %c0_i32_0 : i32, i32
  }
  func.func @transform_3(%arg0: i32) -> (i32, i32, i32) {
    %c0_i32 = arith.constant 0 : i32
    %c0_i32_0 = arith.constant 0 : i32
    %c0_i32_1 = arith.constant 0 : i32
    %c0_i32_2 = arith.constant 0 : i32
    return %c0_i32, %c0_i32_0, %c0_i32_1 : i32, i32, i32
  }
  func.func @transform_4(%arg0: i32) -> (i32, i32) {
    %c0_i32 = arith.constant 0 : i32
    %c0_i32_0 = arith.constant 0 : i32
    %c0_i32_1 = arith.constant 0 : i32
    return %c0_i32, %c0_i32_0 : i32, i32
  }
  func.func @transform_5(%arg0: i32) -> (i32, i32, i32) {
    %c0_i32 = arith.constant 0 : i32
    %c0_i32_0 = arith.constant 0 : i32
    %c0_i32_1 = arith.constant 0 : i32
    return %arg0, %c0_i32, %c0_i32_0 : i32, i32, i32
  }
  func.func @transform_6(%arg0: i32) -> (i32, i32) {
    %c0_i32 = arith.constant 0 : i32
    %c0_i32_0 = arith.constant 0 : i32
    %c0_i32_1 = arith.constant 0 : i32
    return %c0_i32, %c0_i32_0 : i32, i32
  }
  func.func @transform_7(%arg0: i32) -> (i32, i32) {
    %c0_i32 = arith.constant 0 : i32
    %c0_i32_0 = arith.constant 0 : i32
    %c0_i32_1 = arith.constant 0 : i32
    return %c0_i32, %c0_i32_0 : i32, i32
  }
  func.func @transform_8(%arg0: i32) -> (i32, i32) {
    %c0_i32 = arith.constant 0 : i32
    %c0_i32_0 = arith.constant 0 : i32
    %c0_i32_1 = arith.constant 0 : i32
    return %c0_i32, %c0_i32_0 : i32, i32
  }
  func.func @transform_9(%arg0: i32) -> (i32, i32) {
    %c0_i32 = arith.constant 0 : i32
    %c0_i32_0 = arith.constant 0 : i32
    %c0_i32_1 = arith.constant 0 : i32
    return %c0_i32, %c0_i32_0 : i32, i32
  }
  func.func @transform_10(%arg0: i32) -> (i32, i32) {
    %c0_i32 = arith.constant 0 : i32
    %c0_i32_0 = arith.constant 0 : i32
    %c0_i32_1 = arith.constant 0 : i32
    return %c0_i32, %c0_i32_0 : i32, i32
  }
  func.func @transform_11(%arg0: i32) -> (i32, i32) {
    %c0_i32 = arith.constant 0 : i32
    %c0_i32_0 = arith.constant 0 : i32
    %c0_i32_1 = arith.constant 0 : i32
    return %c0_i32, %c0_i32_0 : i32, i32
  }
  func.func @transform_12(%arg0: i32) -> (i32, i32, i32) {
    %c0_i32 = arith.constant 0 : i32
    %c0_i32_0 = arith.constant 0 : i32
    %c0_i32_1 = arith.constant 0 : i32
    return %arg0, %c0_i32, %c0_i32_0 : i32, i32, i32
  }
}

</mosaic_0001>

<bundles_post_ra>
// kernel: tpu_custom_call.1
= control target key start
LH: loop header
LB: loop body
LE: loop exit
PB: predicated region body
PF: predicated region fallthrough
CT: control target
= control target key end

     0   :  { %s1871_s0 = inlined_call_operand.vmem [shape: bf16[2,16,144], index: 0, kind: input, shape index: {}]   ;;  %s1872_s1 = inlined_call_operand.vmem [shape: bf16[144,32], index: 1, kind: input, shape index: {}]   ;;  %s1873_s2 = inlined_call_operand.vmem [shape: f32[1,32], index: 2, kind: input, shape index: {}]   ;;  %s1874_s3 = inlined_call_operand.hbm [shape: bf16[9,32,32], index: 3, kind: input, shape index: {}]   ;;  %s1875_s4 = inlined_call_operand.vmem [shape: f32[1,32], index: 4, kind: input, shape index: {}]   ;;  %s1876_s5 = inlined_call_operand.vmem [shape: bf16[2,16,16], index: 5, kind: input, shape index: {}]   ;;  %s1877_s6 = inlined_call_operand.vmem [shape: bf16[16,32], index: 6, kind: input, shape index: {}]   ;;  %s1878_s7 = inlined_call_operand.vmem [shape: f32[1,32], index: 7, kind: input, shape index: {}]   ;;  %s1879_s8 = inlined_call_operand.vmem [shape: f32[32,2], index: 8, kind: input, shape index: {}]   ;;  %s1880_s9 = inlined_call_operand.vmem [shape: f32[1,2], index: 9, kind: input, shape index: {}]   ;;  %s1881_s10 = inlined_call_operand.vmem [shape: f32[2,32], index: 10, kind: input, shape index: {}]   ;;  %s1882_s11 = inlined_call_operand.vmem [shape: f32[1,32], index: 11, kind: input, shape index: {}]   ;;  %s1883_s12 = inlined_call_operand.hbm [shape: f32[2,16,32], index: 12, kind: output, shape index: {}]  }
   0x1   :  { %1884 = sst [smem:[#allocation10_spill]] %s1871_s0 }
   0x2   :  { %1885 = sst [smem:[#allocation11_spill]] %s1874_s3 }
   0x3   :  { %17 = vsyncpa [#allocation4], 0 }
   0x4   :  { %18 = vsyncpa [#allocation5], 0 }
   0x5   :  { %20 = vsyncpa [#allocation5 + $0x1], 0  ;;  %s1666_s21 = smov 0   ;;  %s1668_s22 = smov 0  }
   0x6   :  { %s1670_s23 = smov 0   ;;  %s1672_s24 = smov 0  }
   0x7 LB: > { %s1687_s25 = sadd.s32 4294967295, %s1592_s24   ;;  %s1238_s26 = sadd.s32 4294967294, %s1592_s24   ;;  %s1592_s24 = sphi %s1672_s24, %s1895_s24   ;;  %s1588_s23 = sphi %s1670_s23, %s1894_s23   ;;  %s1584_s22 = sphi %s1668_s22, %s1893_s22   ;;  %s1580_s21 = sphi %s1666_s21, %s1892_s21  }
   0x8   : > { %s1691_s27 = sadd.s32 1, %s1592_s24   ;;  %s295_s28 = sadd.s32 1, %s1588_s23 }
   0x9   : > { %s292_s29 = ssub.s32 %s1592_s24, %s1691_s27  ;;  %p305_p0 = scmp.ne.s32.totalorder %s1588_s23, %s1584_s22 }
   0xa   : > { %p293_p1 = scmp.eq.s32.totalorder %s292_s29, 0  ;;  %p306_p2 = scmp.eq.s32.totalorder %s1687_s25, 1 }
   0xb   : > { %p311_p3 = scmp.ne.s32.totalorder %s1584_s22, %s1580_s21  ;;  %p312_p4 = scmp.eq.s32.totalorder %s1238_s26, 1 }
   0xc   : > { %s1702_s30 = scalar_select %p293_p1, %s1588_s23, %s295_s28  }
   0xd   : > { %p1704_p5 = por %p306_p2, %p305_p0  ;;  %p1708_p6 = por %p312_p4, %p311_p3 }
   0xe   : > { %1886 = sst [smem:[#allocation9_spill]] %s1702_s30  ;;  %p1239_p7 = scmp.ge.s32.totalorder %s1592_s24, 1 }
   0xf   : > { %p319_p8 = scmp.lt.s32.totalorder %s1592_s24, 3  ;;  %p1445_p9 = scmp.eq.s32.totalorder %s1687_s25, 0 }
  0x10   : > { %s1889_s3 = sld [smem:[#allocation11_spill]]  ;;  %s1594_s18 = smov [#allocation3]  }
  0x11   : > { %p320_p10 = pnand %p1239_p7, %p319_p8  ;;  %s338_s19 = sshll.u32 %s1594_s18, 4  ;;  %s339_s19 = int_to_ptr.vmem [resolvable:$true] %s338_s19 }
  0x12   : > { %s1595_s20 = smov 64   ;;  %s1596_s26 = smov 4  }
  0x13   : > { %p1437_p11 = pneg %p320_p10  ;;  %391 = sbr.rel (%p320_p10) target bundleno = 712 (0x2c8), region = 68 }
  0x15   : > { %p1438_p12 = pnand %p1445_p9, %p1437_p11 }
  0x16   : > { %s336_s17 = sshll.u32 %s1889_s3, 4  ;;  %s337_s17 = int_to_ptr.hbm [resolvable:$true] %s336_s17 }
  0x17   : > { %1440 = dma.hbm_to_vmem [thread:$0]  (!%p1438_p12), %s337_s17, 2304, %s339_s19, [#allocation4], %s1595_s20, %s1595_s20, %s1596_s26  }
  0x18   : > { %1571 = dma.done.wait (%p1445_p9), [#allocation4], 2304  }
  0x19   : > { %1573 = vsyncadd (%p1445_p9), [#allocation4], 4294964992  ;;  %p439_p13 = scmp.lt.s32.totalorder %s1687_s25, 1  ;;  %s1890_s0 = sld [smem:[#allocation10_spill]]  ;;  %v1408_v0 = vld [vmem:[%s1872_s1 + $0x38] sm:$0xff]  ;;  %v1407_v1 = vld [vmem:[%s1872_s1 + $0x30] sm:$0xff]  ;;  %v579_v30 = vlaneseq }
  0x1a   : > { %541 = vmatpush.bf16.msra.mxu0 %v1408_v0  ;;  %v1409_v2 = vld [vmem:[%s1872_s1 + $0x40] sm:$0xff]  ;;  %vm537_vm0 = vcmask 130048   ;;  %v1406_v6 = vld [vmem:[%s1872_s1 + $0x28] sm:$0xff]  ;;  %v1404_v8 = vld [vmem:[%s1872_s1 + $0x18] sm:$0xff]  ;;  %vm571_vm1 = vcmask 261120   ;;  %v1597_v15 = vmov 0.0  }
  0x1b   : > { %s1726_s28 = scalar_select %p439_p13, %s1687_s25, 1  ;;  %562 = vmatpush.bf16.msra.mxu1 %v1409_v2  ;;  %v1405_v7 = vld [vmem:[%s1872_s1 + $0x20] sm:$0xff]  ;;  %v1403_v9 = vld [vmem:[%s1872_s1 + $0x10] sm:$0xff]  ;;  %v1402_v10 = vld [vmem:[%s1872_s1 + $0x8] sm:$0xff]  ;;  %572 = vst.msk [vmem:[#allocation2] sm:$0xff] %vm571_vm1, %v1597_v15  ;;  %vm575_vm2 = vcmask 254976  }
  0x1c   : > { %v1401_v11 = vld [vmem:[%s1872_s1] sm:$0xff]  ;;  %573 = vst.msk [vmem:[#allocation2 + $0x8] sm:$0xff] %vm571_vm1, %v1597_v15  ;;  %v1413_v16 = vld [vmem:[#allocation3 + $0x18] sm:$0xff]  ;;  %v1411_v17 = vld [vmem:[#allocation3 + $0x8] sm:$0xff]  ;;  %v580_v36 = vshrl.u32 %v579_v30, 7  ;;  %vm1048_vm7 = vcmask 1041408  }
  0x1d   : > { %s1397_s29 = sshll.u32 %s1726_s28, 4  ;;  %574 = vst.msk [vmem:[#allocation2 + $0x10] sm:$0xff] %vm571_vm1, %v1597_v15  ;;  %v1415_v18 = vld [vmem:[#allocation3 + $0x28] sm:$0xff]  ;;  %656 = vmatpush.bf16.msra.mxu2 %v1413_v16  ;;  %685 = vmatpush.bf16.msra.mxu3 %v1411_v17  ;;  %v1412_v20 = vld [vmem:[#allocation3 + $0x10] sm:$0xff]  ;;  %v1410_v21 = vld [vmem:[#allocation3] sm:$0xff]  ;;  %s1398_s16 = sshll.u32 %s1726_s28, 3 }
  0x1e   : > { %542 = vmatpush.bf16.msra.mxu0 %v1407_v1  ;;  %v1427_v19 = vld [vmem:[#allocation3 + $0x88] sm:$0xff]  ;;  %576 = vst.msk [vmem:[#allocation2 + $0x18] sm:$0x3] %vm575_vm2, %v1597_v15  ;;  %v1414_v22 = vld [vmem:[#allocation3 + $0x20] sm:$0xff]  ;;  %v1417_v24 = vld [vmem:[#allocation3 + $0x38] sm:$0xff]  ;;  %v581_v38 = vadd.s32 8, %v580_v36  ;;  %s448_s19 = scalar_lea.vmem %s1876_s5, %s1398_s16 }
  0x1f   : > { %s443_s18 = scalar_lea.vmem %s1890_s0, %s1397_s29  ;;  %736 = vmatpush.bf16.msrb.mxu1 %v1415_v18  ;;  %v1426_v23 = vld [vmem:[#allocation3 + $0x80] sm:$0xff]  ;;  %v1419_v25 = vld [vmem:[#allocation3 + $0x48] sm:$0xff]  ;;  %v1416_v26 = vld [vmem:[#allocation3 + $0x30] sm:$0xff]  ;;  %v586_v41 = vand.u32 3, %v580_v36  ;;  %vm1044_vm9 = vcmask 15360   ;;  %s1430_s16 = sshll.u32 %s1687_s25, 4 }
  0x20   : > { %v1399_v3 = vld [vmem:[%s443_s18 + $0x4] sm:$0xf]  ;;  %v1253_v4 = vld [vmem:[%s443_s18 + $0x8] sm:$0xf0]  ;;  %v1251_v12 = vld [vmem:[%s443_s18] sm:$0xf]  ;;  %s1148_s26 = scalar_lea.hbm %s1883_s12, %s1430_s16 }
  0x21   : > { %v1256_v5 = vor.u32 %v1399_v3, %v1253_v4  ;;  %v1400_v13 = vld [vmem:[%s443_s18 + $0x4] sm:$0xf0]  ;;  %657 = vmatpush.bf16.msra.mxu2 %v1412_v20  ;;  %686 = vmatpush.bf16.msra.mxu3 %v1410_v21  ;;  %v1487_v27 = vld [vmem:[%s1873_s2] ss:$0 sm:$0xff]  ;;  %v1421_v28 = vld [vmem:[#allocation3 + $0x58] sm:$0xff]  ;;  %v593_v42 = vand.u32 3, %v581_v38 }
  0x22   : > { %543 = vmatpush.bf16.msra.mxu0 %v1406_v6  ;;  %v1252_v14 = vor.u32 %v1400_v13, %v1251_v12  ;;  %v1418_v29 = vld [vmem:[#allocation3 + $0x40] sm:$0xff]  ;;  %v1420_v31 = vld [vmem:[#allocation3 + $0x50] sm:$0xff]  ;;  %v608_v46 = vadd.s32 4294967295, %v586_v41  ;;  %v695_v48 = vadd.s32 1, %v586_v41  ;;  %v1423_v56 = vld [vmem:[#allocation3 + $0x68] sm:$0xff]  ;;  %s436_s18 = sand.u32 1, %s1584_s22  }
  0x23   : > { %1293 = vmatmul.msk.bf16.vlgmr.msra.gmra.mxu1 %vm537_vm0, %v1256_v5  ;;  %v609_v47 = vadd.s32 4294967295, %v593_v42  ;;  %v696_v49 = vadd.s32 1, %v593_v42  ;;  %v1425_v6 = vld [vmem:[#allocation3 + $0x78] sm:$0xff]  ;;  %s1244_s3 = sshll.u32 %s436_s18, 4  ;;  %s1151_s15 = sshll.u32 %s1148_s26, 4  ;;  %s1152_s15 = int_to_ptr.hbm [resolvable:$true] %s1151_s15 }
  0x24   : > { %737 = vmatpush.bf16.msrb.mxu1 %v1414_v22  ;;  %vm610_vm3 = vcmp.ge.s32.totalorder %v608_v46, 0  ;;  %vm699_vm5 = vcmp.lt.s32.totalorder %v695_v48, 4  ;;  %v1015_v48 = vld [vmem:[%s1879_s8 + $0x10] sm:$0xff]  ;;  %s438_s25 = scalar_lea.vmem [#allocation6], %s1244_s3  ;;  %s1137_s28 = scalar_lea.sflag [#allocation5], %s436_s18 }
  0x25   : > { %777 = vmatpush.bf16.msrb.mxu2 %v1417_v24  ;;  %816 = vmatpush.bf16.msrb.mxu3 %v1419_v25  ;;  %vm611_vm4 = vcmp.ge.s32.totalorder %v609_v47, 0  ;;  %vm700_vm6 = vcmp.lt.s32.totalorder %v696_v49, 4  ;;  %v1294_v51 = vsel %vm610_vm3, 1.0, %v1597_v15  ;;  %v1314_v54 = vsel %vm699_vm5, 1.0, %v1597_v15  ;;  %v1016_v47 = vld [vmem:[%s1879_s8 + $0x18] sm:$0xff]  ;;  %s1149_s29 = sshll.u32 %s438_s25, 4  ;;  %s1150_s29 = int_to_ptr.vmem [resolvable:$true] %s1149_s29 }
  0x26   : > { %544 = vmatpush.bf16.msra.mxu0 %v1405_v7  ;;  %v1295_v52 = vsel %vm611_vm4, 1.0, %v1597_v15  ;;  %v1315_v55 = vsel %vm700_vm6, 1.0, %v1597_v15  ;;  %s1540_s0 = sshra.s32 %s1152_s15, 4  ;;  %s1546_s17 = scalar_lea.hbm %s1883_s12, 32  ;;  %s1541_s0 = int_to_ptr.hbm [resolvable:$true] %s1540_s0 }
  0x27   : > { %s1542_s16 = scalar_lea.hbm %s1541_s0, 16  ;;  %p1547_p3 = scmp.lt.s32.totalorder %s1541_s0, %s1883_s12 }
  0x28   : > { %857 = vmatpush.bf16.msra.mxu1 %v1421_v28  ;;  %p1543_p0 = scmp.ne.s32.totalorder %s1541_s0, %s1542_s16  ;;  %p1548_p4 = scmp.lt.s32.totalorder %s1546_s17, %s1542_s16 }
  0x29   : > { %778 = vmatpush.bf16.msrb.mxu2 %v1416_v26  ;;  %817 = vmatpush.bf16.msrb.mxu3 %v1418_v29 }
  0x2a   : > { %545 = vmatpush.bf16.msra.mxu0 %v1404_v8  ;;  %p1544_p1 = pnand %p1543_p0, %p1704_p5  ;;  %p1549_p7 = por %p1548_p4, %p1547_p3 }
  0x2c   : > { %858 = vmatpush.bf16.msra.mxu1 %v1420_v31  ;;  %p1545_p2 = pneg %p1544_p1 }
  0x2e   : > { %546 = vmatpush.bf16.msra.mxu0 %v1403_v9  ;;  %v1422_v9 = vld [vmem:[#allocation3 + $0x60] sm:$0xff]  ;;  %p1550_p8 = pnand %p1549_p7, %p1545_p2 }
  0x32   : > { %547 = vmatpush.bf16.msra.mxu0 %v1402_v10  ;;  %v1424_v10 = vld [vmem:[#allocation3 + $0x70] sm:$0xff] }
  0x36   : > { %548 = vmatpush.bf16.msra.mxu0 %v1401_v11 }
  0x39   : > { %549 = vmatmul.bf16.vlgmr.msra.gmra.mxu0 %v1252_v14 }
  0x3a   : > { %978 = vmatpush.bf16.msrb.mxu0 %v1427_v19 }
  0x3e   : > { %979 = vmatpush.bf16.msrb.mxu0 %v1426_v23 }
  0xa0   : > { %v564_v32 = vpop.f32.mrf.mxu1 }
  0xa8   : > { %v566_v43 = vpop.f32.mrf.mxu1 }
  0xb6   : > { %v550_v33 = vpop.f32.mrf.mxu0 }
  0xb7   : > { %v551_v34 = vadd.f32 %v1487_v27, %v550_v33 }
  0xb9   : > { %v565_v35 = vadd.f32 %v564_v32, %v551_v34 }
  0xbb   : > { %v569_v37 = vmax.f32 %v565_v35, 0.0 }
  0xbd   : > { %577 = vst.msk [vmem:[#allocation2 + $0x5] sm:$0xff] %vm571_vm1, %v569_v37 }
  0xbe   : > { %v552_v39 = vpop.f32.mrf.mxu0 }
  0xbf   : > { %v553_v40 = vadd.f32 %v1487_v27, %v552_v39 }
  0xc1   : > { %v567_v44 = vadd.f32 %v566_v43, %v553_v40 }
  0xc3   : > { %v570_v45 = vmax.f32 %v567_v44, 0.0 }
  0xc4   : > { %v606_v50 = vld [vmem:[#allocation2] sm:$0xff] }
  0xc5   : > { %578 = vst.msk [vmem:[#allocation2 + $0xd] sm:$0xff] %vm571_vm1, %v570_v45  ;;  %v693_v53 = vld [vmem:[#allocation2 + $0x2] sm:$0xff]  ;;  %v620_v61 = vmul.f32 %v1294_v51, %v606_v50 }
  0xc6   : > { %v627_v57 = vld [vmem:[#allocation2 + $0x1] sm:$0xff]  ;;  %v707_v1 = vmul.f32 %v1314_v54, %v693_v53 }
  0xc7   : > { %v746_v12 = vld [vmem:[#allocation2 + $0x4] sm:$0xff] }
  0xc8   : > { %v748_v16 = vmul.f32 %v1294_v51, %v746_v12  ;;  %v787_v21 = vld [vmem:[#allocation2 + $0x5] sm:$0xff] }
  0xcc   : > { %v628_v58 = vld [vmem:[#allocation2 + $0x9] sm:$0xff]  ;;  %v948_v0 = vld [vmem:[#allocation2 + $0x12] sm:$0xff] }
  0xcd   : > { %v607_v59 = vld [vmem:[#allocation2 + $0x8] sm:$0xff]  ;;  %v629_v60 = vpack.c.bf16 %v628_v58, %v627_v57  ;;  %v950_v4 = vmul.f32 %v1315_v55, %v948_v0  ;;  %v868_v24 = vld [vmem:[#allocation2 + $0x10] sm:$0xff] }
  0xce   : > { %v621_v62 = vmul.f32 %v1295_v52, %v607_v59  ;;  %v694_v63 = vld [vmem:[#allocation2 + $0xa] sm:$0xff]  ;;  %v869_v25 = vmul.f32 %v1294_v51, %v607_v59  ;;  %v870_v26 = vmul.f32 %v1295_v52, %v868_v24  ;;  %v1042_v59 = vld [vmem:[%s1881_s10] sm:$0x3] }
  0xcf   : > { %v708_v2 = vmul.f32 %v1315_v55, %v694_v63  ;;  %v949_v3 = vmul.f32 %v1314_v54, %v694_v63  ;;  %1304 = vmatmul.msk.bf16.vlgmr.msra.gmra.mxu2 %vm571_vm1, %v629_v60  ;;  %v747_v11 = vld [vmem:[#allocation2 + $0xc] sm:$0xff]  ;;  %v1488_v63 = vld [vmem:[%s1875_s4] ss:$0 sm:$0xff] }
  0xd0   : > { %v622_v5 = vpack.c.bf16 %v621_v62, %v620_v61  ;;  %898 = vmatpush.bf16.msra.mxu2 %v1423_v56  ;;  %v749_v13 = vmul.f32 %v1295_v52, %v747_v11  ;;  %v826_v14 = vld [vmem:[#allocation2 + $0x6] sm:$0xff]  ;;  %v827_v15 = vld [vmem:[#allocation2 + $0xe] sm:$0xff]  ;;  %v871_v28 = vpack.c.bf16 %v870_v26, %v869_v25  ;;  %v1598_v61 = vmov 16.0  }
  0xd1   : > { %v709_v7 = vpack.c.bf16 %v708_v2, %v707_v1  ;;  %v951_v8 = vpack.c.bf16 %v950_v4, %v949_v3  ;;  %v788_v17 = vld [vmem:[#allocation2 + $0xd] sm:$0xff]  ;;  %v828_v18 = vmul.f32 %v1314_v54, %v826_v14  ;;  %v829_v19 = vmul.f32 %v1315_v55, %v827_v15  ;;  %v1013_v56 = vld [vmem:[%s1879_s8] sm:$0xff] }
  0xd2   : > { %1313 = vmatmul.msk.bf16.vlgmr.msra.gmra.mxu3 %vm571_vm1, %v622_v5  ;;  %v750_v20 = vpack.c.bf16 %v749_v13, %v748_v16  ;;  %v789_v22 = vpack.c.bf16 %v788_v17, %v787_v21  ;;  %v909_v27 = vld [vmem:[#allocation2 + $0x11] sm:$0xff]  ;;  %v1014_v52 = vld [vmem:[%s1879_s8 + $0x8] sm:$0xff]  ;;  %1490 = vrcp.f32 %v1598_v61 }
  0xd3   : > { %1324 = vmatmul.msk.bf16.vlgmr.msrb.gmra.mxu1 %vm571_vm1, %v709_v7  ;;  %1378 = vmatmul.msk.bf16.vlgmr.msrb.gmra.mxu0 %vm571_vm1, %v951_v8  ;;  %v830_v23 = vpack.c.bf16 %v829_v19, %v828_v18  ;;  %v910_v29 = vpack.c.bf16 %v909_v27, %v628_v58  ;;  %v1429_v27 = vld [vmem:[%s1877_s6] sm:$0xff] }
  0xd4   : > { %937 = vmatpush.bf16.msra.mxu3 %v1425_v6  ;;  %899 = vmatpush.bf16.msra.mxu2 %v1422_v9 }
  0xd5   : > { %1033 = vmatpush.msrb.mxu1 %v1016_v47 }
  0xd7   : > { %1034 = vmatpush.msrb.mxu1 %v1015_v48 }
  0xd8   : > { %938 = vmatpush.bf16.msra.mxu3 %v1424_v10  ;;  %v1491_v6 = vpop.eup %1490 }
  0xd9   : > { %1035 = vmatpush.msrb.mxu1 %v1014_v52  ;;  %v1006_v11 = vmul.f32 16.0, %v1491_v6  ;;  %vm1010_vm8 = vweird.f32 %v1491_v6 }
  0xdb   : > { %1036 = vmatpush.msrb.mxu1 %v1013_v56  ;;  %v1007_v15 = vsub.f32 1.0, %v1006_v11 }
  0xdd   : > { %v1008_v18 = vmul.f32 %v1491_v6, %v1007_v15 }
  0xdf   : > { %1333 = vmatmul.msk.bf16.vlgmr.msrb.gmra.mxu2 %vm571_vm1, %v750_v20  ;;  %v1009_v21 = vadd.f32 %v1491_v6, %v1008_v18 }
  0xe0   : > { %1380 = vmatpush.msk.msrb.mxu2 %vm1048_vm7, %v1042_v59 }
  0xe1   : > { %v1011_v24 = vsel %vm1010_vm8, %v1491_v6, %v1009_v21 }
  0xe2   : > { %1342 = vmatmul.msk.bf16.vlgmr.msrb.gmra.mxu3 %vm571_vm1, %v789_v22 }
  0xe3   : > { %1351 = vmatmul.msk.bf16.vlgmr.msra.gmra.mxu1 %vm571_vm1, %v830_v23  ;;  %1120 = vmatpush.bf16.msrb.mxu3 %v1429_v27 }
  0xef   : > { %1360 = vmatmul.msk.bf16.vlgmr.msra.gmra.mxu2 %vm571_vm1, %v871_v28  ;;  %v1428_v28 = vld [vmem:[%s448_s19] sm:$0xff] }
  0xf2   : > { %1369 = vmatmul.msk.bf16.vlgmr.msra.gmra.mxu3 %vm571_vm1, %v910_v29  ;;  %v1017_v29 = vld [vmem:[%s1880_s9] sm:$0x1] }
 0x102   : > { %1391 = vmatmul.msk.bf16.vlgmr.msrb.gmra.mxu3 %vm537_vm0, %v1428_v28 }
 0x150   : > { %v739_v32 = vpop.f32.mrf.mxu1  ;;  %v981_v54 = vpop.f32.mrf.mxu0 }
 0x152   : > { %v659_v30 = vpop.f32.mrf.mxu2 }
 0x155   : > { %v688_v31 = vpop.f32.mrf.mxu3 }
 0x156   : > { %v689_v36 = vadd.f32 %v688_v31, %v659_v30 }
 0x158   : > { %v741_v37 = vpop.f32.mrf.mxu1  ;;  %v744_v39 = vadd.f32 %v739_v32, %v689_v36  ;;  %v983_v7 = vpop.f32.mrf.mxu0 }
 0x15a   : > { %v661_v33 = vpop.f32.mrf.mxu2 }
 0x15d   : > { %v690_v34 = vpop.f32.mrf.mxu3 }
 0x15e   : > { %v691_v42 = vadd.f32 %v690_v34, %v661_v33  ;;  %v1043_v33 = vld [vmem:[%s1882_s11] sm:$0x1] }
 0x160   : > { %v860_v45 = vpop.f32.mrf.mxu1  ;;  %v745_v46 = vadd.f32 %v741_v37, %v691_v42 }
 0x162   : > { %v780_v35 = vpop.f32.mrf.mxu2 }
 0x163   : > { %v785_v40 = vadd.f32 %v780_v35, %v744_v39 }
 0x165   : > { %v819_v38 = vpop.f32.mrf.mxu3 }
 0x166   : > { %v824_v44 = vadd.f32 %v819_v38, %v785_v40 }
 0x168   : > { %v865_v50 = vadd.f32 %v860_v45, %v824_v44  ;;  %v862_v60 = vpop.f32.mrf.mxu1 }
 0x16a   : > { %v782_v41 = vpop.f32.mrf.mxu2 }
 0x16b   : > { %v786_v49 = vadd.f32 %v782_v41, %v745_v46 }
 0x16d   : > { %v821_v43 = vpop.f32.mrf.mxu3 }
 0x16e   : > { %v825_v57 = vadd.f32 %v821_v43, %v786_v49  ;;  %v1489_v49 = vld [vmem:[%s1878_s7] ss:$0 sm:$0xff] }
 0x170   : > { %v866_v0 = vadd.f32 %v862_v60, %v825_v57 }
 0x172   : > { %v901_v51 = vpop.f32.mrf.mxu2 }
 0x173   : > { %v906_v53 = vadd.f32 %v901_v51, %v865_v50 }
 0x175   : > { %v940_v55 = vpop.f32.mrf.mxu3 }
 0x176   : > { %v945_v58 = vadd.f32 %v940_v55, %v906_v53 }
 0x178   : > { %v986_v62 = vadd.f32 %v981_v54, %v945_v58 }
 0x17a   : > { %v903_v1 = vpop.f32.mrf.mxu2  ;;  %v1803_v4 = vadd.f32 %v1488_v63, %v986_v62 }
 0x17b   : > { %v907_v2 = vadd.f32 %v903_v1, %v866_v0 }
 0x17c   : > { %v994_v9 = vmax.f32 %v1803_v4, 0.0 }
 0x17d   : > { %v942_v3 = vpop.f32.mrf.mxu3 }
 0x17e   : > { %v946_v5 = vadd.f32 %v942_v3, %v907_v2  ;;  %v996_v13 = vsel %vm571_vm1, %v994_v9, 0.0 }
 0x180   : > { %v987_v8 = vadd.f32 %v983_v7, %v946_v5 }
 0x182   : > { %v1806_v10 = vadd.f32 %v1488_v63, %v987_v8 }
 0x184   : > { %v995_v12 = vmax.f32 %v1806_v10, 0.0 }
 0x185   : > { %v1122_v40 = vpop.f32.mrf.mxu3 }
 0x186   : > { %v997_v14 = vsel %vm571_vm1, %v995_v12, 0.0  ;;  %v1123_v53 = vadd.f32 %v1489_v49, %v1122_v40 }
 0x187   : > { %v998_v16 = vadd.f32 %v997_v14, %v996_v13 }
 0x189   : > { %v999_v17 = vrot.slane %v998_v16, 4 }
 0x18b   : > { %v1000_v19 = vadd.f32 %v999_v17, %v998_v16 }
 0x18d   : > { %v1001_v20 = vrot.slane %v1000_v19, 2  ;;  %v1124_v51 = vpop.f32.mrf.mxu3 }
 0x18e   : > { %v1125_v55 = vadd.f32 %v1489_v49, %v1124_v51 }
 0x18f   : > { %v1002_v22 = vadd.f32 %v1001_v20, %v1000_v19 }
 0x191   : > { %v1003_v23 = vrot.slane %v1002_v22, 1 }
 0x193   : > { %v1004_v25 = vadd.f32 %v1003_v23, %v1002_v22 }
 0x195   : > { %v1012_v26 = vmul.f32 %v1011_v24, %v1004_v25 }
 0x197   : > { %1379 = vmatmul.msk.f32.vlgmr.msrb.gmra.mxu1 %vm571_vm1, %v1012_v26 }
 0x214   : > { %v1038_v30 = vpop.f32.mrf.mxu1 }
 0x215   : > { %v1039_v31 = vadd.f32 %v1038_v30, %v1017_v29 }
 0x217   : > { %v1041_v32 = vmax.f32 %v1039_v31, 0.0 }
 0x219   : > { %1381 = vmatmul.msk.f32.vlgmr.msrb.gmra.mxu2 %vm1044_vm9, %v1041_v32 }
 0x29c   : > { %v1069_v34 = vpop.f32.mrf.mxu2 }
 0x29d   : > { %v1070_v35 = vadd.f32 %v1069_v34, %v1043_v33 }
 0x29f   : > { %v1382_v36 = vmul.f32 -1.442695, %v1070_v35 }
 0x2a1   : > { %1492 = vpow2.f32 %v1382_v36 }
 0x2a7   : > { %v1493_v37 = vpop.eup %1492 }
 0x2a8   : > { %v1075_v38 = vadd.f32 1.0, %v1493_v37 }
 0x2aa   : > { %1494 = vrcp.f32 %v1075_v38  ;;  %v1087_v43 = vand.u32 2147483648, %v1075_v38  ;;  %v1085_v45 = vand.u32 2147483647, %v1075_v38  ;;  %vm1081_vm11 = vweird.f32 %v1075_v38 }
 0x2ac   : > { %v1088_v47 = vor.u32 1.1754944e-38, %v1087_v43  ;;  %vm1086_vm13 = vcmp.eq.f32.partialorder %v1085_v45, 8.507059e+37 }
 0x2b0   : > { %v1495_v39 = vpop.eup %1494 }
 0x2b1   : > { %v1077_v41 = vmul.f32 %v1495_v39, %v1075_v38  ;;  %vm1082_vm10 = vweird.f32 %v1495_v39 }
 0x2b2   : > { %vm1083_vm12 = vmor %vm1081_vm11, %vm1082_vm10 }
 0x2b3   : > { %v1078_v42 = vsub.f32 1.0, %v1077_v41 }
 0x2b5   : > { %v1079_v44 = vmul.f32 %v1495_v39, %v1078_v42 }
 0x2b7   : > { %v1080_v46 = vadd.f32 %v1495_v39, %v1079_v44 }
 0x2b9   : > { %v1084_v48 = vsel %vm1083_vm12, %v1495_v39, %v1080_v46 }
 0x2ba   : > { %v1089_v50 = vsel %vm1086_vm13, %v1088_v47, %v1084_v48 }
 0x2bb   : > { %v1127_v52 = vperm.slane %v1089_v50, 0 }
 0x2bd   : > { %v1128_v54 = vmul.f32 %v1127_v52, %v994_v9  ;;  %v1129_v56 = vmul.f32 %v1127_v52, %v995_v12 }
 0x2bf   : > { %v1130_v57 = vadd.f32 %v1128_v54, %v1123_v53  ;;  %v1131_v58 = vadd.f32 %v1129_v56, %v1125_v55 }
 0x2c1   : > { %v1132_v59 = vmax.f32 %v1130_v57, 0.0  ;;  %v1133_v60 = vmax.f32 %v1131_v58, 0.0 }
 0x2c3   : > { %1134 = vst.msk [vmem:[%s438_s25] sm:$0xff] %vm571_vm1, %v1132_v59 }
 0x2c4   : > { %1135 = vst.msk [vmem:[%s438_s25 + $0x8] sm:$0xff] %vm571_vm1, %v1133_v60 }
 0x2c5   : > { %1553 = shalt.err (!%p1550_p8)
}
 0x2c6   : > { %s1599_s18 = smov 128   ;;  %s1600_s26 = smov 8  }
 0x2c7   : > { %1435 = dma.vmem_to_hbm [thread:$0]  (%p1704_p5), %s1150_s29, 256, %s1152_s15, %s1137_s28, %s1599_s18, %s1599_s18, %s1600_s26  }
 0x2c8 PF: > { %p1447_p9 = scmp.ge.s32.totalorder %s1592_s24, 2  ;;  %s1166_s25 = sand.u32 1, %s1580_s21  }
 0x2c9   : > { %s1167_s3 = scalar_lea.sflag [#allocation5], %s1166_s25 }
 0x2ca   : > { %p1442_p10 = pnand %p1447_p9, %p1708_p6 }
 0x2cc   : > { %p1443_p11 = pneg %p1442_p10 }
 0x2ce   : > { %1575 = dma.done.wait (%p1443_p11), %s1167_s3, 256  }
 0x2cf   : > { %1577 = vsyncadd (%p1443_p11), %s1167_s3, 4294967040  ;;  %s1891_s0 = sld [smem:[#allocation9_spill]]  ;;  %p23_p12 = scmp.ge.s32.totalorder %s1691_s27, 4  }
 0x2d0   : > { %s1892_s21 = smov %s1584_s22  ;;  %s1893_s22 = smov %s1588_s23 }
 0x2d1   : > { %s1895_s24 = smov %s1691_s27  ;;  %25 = sbr.rel (!%p23_p12) target bundleno = 7 (0x7), region = 119 }
 0x2d5   : > { %s1894_s23 = smov %s1891_s0 }
 0x2d6   :  { %1173 = vsyncpa [#allocation4], 1 }
 0x2d7   :  { %1175 = vsyncpa [#allocation4 + $0x1], 1 }
 0x2d8   :  { %1176 = vsyncpa [#allocation5], 1 }
 0x2d9   :  { %1178 = vsyncpa [#allocation5 + $0x1], 1 }

</bundles_post_ra>
